<compile_context>
chip_gen: v5e
topology: v5e:2x2
jax: 0.10.0
libtpu: 0.0.40
codegen_flags: <defaults>
</compile_context>

<pallas_src>
import jax
import jax.numpy as jnp
from jax.experimental import pallas as pl
from jax.experimental.pallas import tpu as pltpu

_BN_EPS = 1e-5
_MiB = 1024 * 1024


# --------------------------- sizing helpers ---------------------------------


def _round_down(x, m):
    return (x // m) * m


def _vmem_capacity_bytes():
    try:
        return int(pltpu.get_tpu_info().vmem_capacity_bytes)
    except Exception:
        return 64 * _MiB  # conservative (v7x per-TC) fallback


def _budgets():
    """(tile_budget, vmem_limit_cap) chosen per TPU generation."""
    cap = _vmem_capacity_bytes()
    if cap >= 96 * _MiB:              # v5e / v6e: 128 MiB VMEM, 1 TensorCore
        return 48 * _MiB, 100 * _MiB
    return 24 * _MiB, 52 * _MiB       # v7x: 64 MiB per TensorCore


def _vmem_limit(need_bytes, cap_limit):
    return int(min(cap_limit, max(int(1.4 * need_bytes), 24 * _MiB)))


# ------------------------------ kernels -------------------------------------


def _fused_kernel(h_ref, emb_ref, out_ref, acc_ref):
    """Fused matmul + BatchNorm + softmax; whole (B, V) slab resident in VMEM.

    h_ref:   (B, E)    bf16  precomputed z @ topic_w.T
    emb_ref: (TV, E)   f32   one vocab tile of word_embeddings.weight (V, E)
    out_ref: (B, V)    f32   final probabilities (written on the last step)
    acc_ref: (B, V)    f32   VMEM scratch holding BN'd logits across steps
    """
    j = pl.program_id(0)
    tv = emb_ref.shape[0]

    emb = emb_ref[...].astype(jnp.bfloat16)               # per-tile cast, in kernel
    recon = jax.lax.dot_general(                           # (B, TV) f32, MXU-native A@B.T
        h_ref[...], emb,
        dimension_numbers=(((1,), (1,)), ((), ())),
        preferred_element_type=jnp.float32,
    )

    # BatchNorm1d(V, affine=False), training mode: per-column batch statistics,
    # biased variance, eps=1e-5.  Full batch is resident, so fully local.
    mean = jnp.mean(recon, axis=0, keepdims=True)
    centered = recon - mean
    var = jnp.mean(centered * centered, axis=0, keepdims=True)
    normed = centered * jax.lax.rsqrt(var + _BN_EPS)

    start = j * tv
    if tv % 128 == 0:
        start = pl.multiple_of(start, 128)
    acc_ref[:, pl.ds(start, tv)] = normed

    @pl.when(j == pl.num_programs(0) - 1)
    def _():
        x = acc_ref[...]
        m = jnp.max(x, axis=1, keepdims=True)
        e = jnp.exp(x - m)
        s = jnp.sum(e, axis=1, keepdims=True)
        out_ref[...] = e / s                               # exact normalization


def _bn_logits_kernel(h_ref, emb_ref, normed_ref):
    """Two-pass / pass 1: BN'd logits for one vocab tile, stored as bf16.

    h_ref:      (B, E)   bf16
    emb_ref:    (TV, E)  f32
    normed_ref: (B, TV)  bf16
    """
    emb = emb_ref[...].astype(jnp.bfloat16)
    recon = jax.lax.dot_general(
        h_ref[...], emb,
        dimension_numbers=(((1,), (1,)), ((), ())),
        preferred_element_type=jnp.float32,
    )
    mean = jnp.mean(recon, axis=0, keepdims=True)
    centered = recon - mean
    var = jnp.mean(centered * centered, axis=0, keepdims=True)
    normed_ref[...] = (centered * jax.lax.rsqrt(var + _BN_EPS)).astype(
        normed_ref.dtype)


def _softmax_kernel(x_ref, o_ref):
    """Two-pass / pass 2: exact, numerically-stable row softmax over full V.

    x_ref: (TB, V) bf16   BN'd logits
    o_ref: (TB, V) f32    probabilities
    """
    x = x_ref[...].astype(jnp.float32)
    m = jnp.max(x, axis=1, keepdims=True)
    e = jnp.exp(x - m)
    s = jnp.sum(e, axis=1, keepdims=True)
    o_ref[...] = e / s                                     # exact normalization


# ------------------------------ wrapper -------------------------------------


def decoder_forward(z, topic_w, vocab_embeddings, *, tile_v=None, tile_b=None,
                    force_two_pass=False):
    """ETM decoder forward.

    z:                (B, T) document-topic weights
    topic_w:          (E, T) topic_embeddings.weight  (nn.Linear layout)
    vocab_embeddings: (V, E) word_embeddings.weight   (nn.Linear layout)
    returns:          (B, V) softmax(BatchNorm(z @ topic_w.T @ vocab_embeddings.T))
    """
    B, T = z.shape
    E, Tw = topic_w.shape
    V, Ev = vocab_embeddings.shape
    assert Tw == T and Ev == E

    tile_budget, cap_limit = _budgets()

    # Tiny (B,T)@(T,E) matmul hoisted to the wrapper: B*E*2 bytes of traffic,
    # removes a per-tile MXU push + f32->bf16 cast from the big kernel.
    h16 = jnp.dot(z.astype(jnp.float32),
                  topic_w.astype(jnp.float32).T).astype(jnp.bfloat16)

    ve = vocab_embeddings  # streamed f32; cast to bf16 per tile inside kernels

    # ---------------- fused single-kernel fast path --------------------------
    per_vrow = 2 * E * 4                       # double-buffered f32 weight tile
    fused_fixed = 4 * B * V * 4 + 2 * B * E * 2  # out + acc scratch + softmax temps + h
    if not force_two_pass and fused_fixed + 128 * per_vrow <= tile_budget:
        rem = tile_budget - fused_fixed
        if tile_v is not None and tile_v <= V and V % tile_v == 0 \
                and tile_v * per_vrow <= rem:
            tv = tile_v
        elif rem >= V * per_vrow:
            tv = V
        elif V % 128 == 0:
            tv = _round_down(rem // per_vrow, 128)
            while tv >= 128 and V % tv != 0:
                tv -= 128
            tv = tv if tv >= 128 else None
        else:
            tv = None
        if tv is not None:
            n_v = V // tv
            need = 2 * B * E * 2 + 2 * tv * E * 4 + 4 * B * V * 4
            return pl.pallas_call(
                _fused_kernel,
                out_shape=jax.ShapeDtypeStruct((B, V), jnp.float32),
                grid=(n_v,),
                in_specs=[
                    pl.BlockSpec((B, E), lambda j: (0, 0)),
                    pl.BlockSpec((tv, E), lambda j: (j, 0)),
                ],
                out_specs=pl.BlockSpec((B, V), lambda j: (0, 0)),
                scratch_shapes=[pltpu.VMEM((B, V), jnp.float32)],
                compiler_params=pltpu.CompilerParams(
                    dimension_semantics=("arbitrary",),
                    vmem_limit_bytes=_vmem_limit(need, cap_limit),
                ),
            )(h16, ve)

    # ---------------- two-pass path (large B*V) -------------------------------
    # pass 1: BN'd logits, vocab-tiled, bf16 HBM intermediate
    if tile_v is None:
        per_col = 2 * E * 4 + 2 * B * 2 + 2 * B * 4   # weight + bf16 out + f32 temps
        tile_v = max(128, _round_down(tile_budget // per_col, 128))
    if tile_v >= V:
        tile_v = V
    n_v = pl.cdiv(V, tile_v)
    need1 = 2 * B * E * 2 + 2 * tile_v * E * 4 + 2 * B * tile_v * 2 \
        + 2 * B * tile_v * 4
    normed = pl.pallas_call(
        _bn_logits_kernel,
        out_shape=jax.ShapeDtypeStruct((B, V), jnp.bfloat16),
        grid=(n_v,),
        in_specs=[
            pl.BlockSpec((B, E), lambda j: (0, 0)),
            pl.BlockSpec((tile_v, E), lambda j: (j, 0)),
        ],
        out_specs=pl.BlockSpec((B, tile_v), lambda j: (0, j)),
        compiler_params=pltpu.CompilerParams(
            dimension_semantics=("parallel",),
            vmem_limit_bytes=_vmem_limit(need1, cap_limit),
        ),
    )(h16, ve)

    # pass 2: exact row softmax, batch-tiled (full V per row, f32 math).
    # (Note: input_output_aliases is not applicable: the bf16 intermediate and
    # the f32 output have different byte sizes.)
    if tile_b is None:
        per_row = 2 * V * 2 + 2 * V * 4 + 2 * V * 4   # in(bf16) + out(f32) + exp/x temps
        tile_b = max(16, _round_down(tile_budget // per_row, 16))
    if tile_b >= B:
        tile_b = B
    n_b = pl.cdiv(B, tile_b)
    need2 = 2 * tile_b * V * 2 + 2 * tile_b * V * 4 + 2 * tile_b * V * 4
    out = pl.pallas_call(
        _softmax_kernel,
        out_shape=jax.ShapeDtypeStruct((B, V), jnp.float32),
        grid=(n_b,),
        in_specs=[pl.BlockSpec((tile_b, V), lambda i: (i, 0))],
        out_specs=pl.BlockSpec((tile_b, V), lambda i: (i, 0)),
        compiler_params=pltpu.CompilerParams(
            dimension_semantics=("parallel",),
            vmem_limit_bytes=_vmem_limit(need2, cap_limit),
        ),
    )(normed)
    return out


# ------------------------------ reference -----------------------------------


def decoder_reference(z, topic_w, vocab_embeddings, *, quantize_bf16=False):
    """Pure-JAX reference.  quantize_bf16=True mimics the kernels' bf16 MXU
    inputs (f32 math on bf16-rounded operands)."""
    def q(x):
        return x.astype(jnp.bfloat16).astype(jnp.float32) if quantize_bf16 else x

    h = z.astype(jnp.float32) @ topic_w.astype(jnp.float32).T
    recon = q(h) @ q(vocab_embeddings).T
    mean = jnp.mean(recon, axis=0, keepdims=True)
    centered = recon - mean
    var = jnp.mean(centered * centered, axis=0, keepdims=True)
    normed = centered * jax.lax.rsqrt(var + _BN_EPS)
    return jax.nn.softmax(normed, axis=1)


# -------------------------------- main ---------------------------------------


if __name__ == "__main__":
    key = jax.random.PRNGKey(0)
    k_z, k_topic, k_vocab = jax.random.split(key, 3)

    batch = 8
    num_topics = 16
    embed_dim = 32
    vocab_size = 256

    # Deterministic synthetic parameters (shapes match the PyTorch module).
    z = jax.random.normal(k_z, (batch, num_topics), dtype=jnp.float32)
    topic_w = jax.random.normal(k_topic, (embed_dim, num_topics),
                                dtype=jnp.float32) * 0.1
    vocab_embeddings = jax.random.normal(k_vocab, (vocab_size, embed_dim),
                                         dtype=jnp.float32) * 0.1

    ref_q = decoder_reference(z, topic_w, vocab_embeddings, quantize_bf16=True)

    # Fused fast path (vocab-tiled weight stream, no HBM intermediate).
    out_fused = jax.block_until_ready(
        decoder_forward(z, topic_w, vocab_embeddings, tile_v=128))
    # Two-pass path (bf16 intermediate + separate exact-softmax pass).
    out_2pass = jax.block_until_ready(
        decoder_forward(z, topic_w, vocab_embeddings, tile_v=128,
                        force_two_pass=True))

    for out in (out_fused, out_2pass):
        assert out.shape == (batch, vocab_size)
        assert bool(jnp.all(jnp.isfinite(out)))
        # Rows are probability distributions (exact normalization in-kernel).
        assert bool(jnp.allclose(jnp.sum(out, axis=1), 1.0, atol=1e-3))
        # Check against a reference with matching bf16 MXU-input rounding.
        assert bool(jnp.allclose(out, ref_q, atol=2e-3, rtol=2e-2))

    # Both paths agree.
    assert bool(jnp.allclose(out_fused, out_2pass, atol=2e-3, rtol=2e-2))

    print("KERNEL_OK")
</pallas_src>

<mosaic_0001>
module attributes {stable_mosaic.version = 11 : i64} {
  func.func @_fused_kernel(%arg0: i32, %arg1: memref<8x32xbf16, #tpu.memory_space<vmem>>, %arg2: memref<128x32xf32, #tpu.memory_space<vmem>>, %arg3: memref<8x256xf32, #tpu.memory_space<vmem>>, %arg4: memref<8x256xf32, #tpu.memory_space<vmem>>) attributes {dimension_semantics = [#tpu.dimension_semantics<arbitrary>], iteration_bounds = array<i64: 2>, scalar_prefetch = 0 : i64, scratch_operands = 1 : i64, tpu.core_type = #tpu.core_type<tc>, window_params = [{pipeline_mode = #tpu.pipeline_mode<synchronous>, transform_indices = @transform_0, window_bounds = array<i64: 8, 32>}, {transform_indices = @transform_1, window_bounds = array<i64: 128, 32>}, {pipeline_mode = #tpu.pipeline_mode<synchronous>, transform_indices = @transform_2, window_bounds = array<i64: 8, 256>}]} {
    %c0 = arith.constant 0 : index
    %c0_0 = arith.constant 0 : index
    %0 = vector.load %arg2[%c0, %c0_0] : memref<128x32xf32, #tpu.memory_space<vmem>>, vector<128x32xf32>
    %1 = arith.truncf %0 : vector<128x32xf32> to vector<128x32xbf16>
    %c0_1 = arith.constant 0 : index
    %c0_2 = arith.constant 0 : index
    %2 = vector.load %arg1[%c0_1, %c0_2] : memref<8x32xbf16, #tpu.memory_space<vmem>>, vector<8x32xbf16>
    %cst = arith.constant dense<0.000000e+00> : vector<8x128xf32>
    %3 = tpu.matmul %2, %1, %cst {dimension_numbers = #tpu.dot_dimension_numbers<[1], [1], [0], [0], [0, 0, 1, 0], [], []>} : vector<8x32xbf16>, vector<128x32xbf16>, vector<8x128xf32> -> vector<8x128xf32>
    %cst_3 = arith.constant dense<0.000000e+00> : vector<128xf32>
    %4 = vector.multi_reduction <add>, %3, %cst_3 [0] : vector<8x128xf32> to vector<128xf32>
    %5 = vector.shape_cast %4 : vector<128xf32> to vector<1x128xf32>
    %cst_4 = arith.constant 8.000000e+00 : f32
    %6 = vector.broadcast %cst_4 : f32 to vector<1x128xf32>
    %7 = arith.divf %5, %6 : vector<1x128xf32>
    %8 = vector.broadcast %7 : vector<1x128xf32> to vector<8x128xf32>
    %9 = arith.subf %3, %8 : vector<8x128xf32>
    %10 = arith.mulf %9, %9 : vector<8x128xf32>
    %cst_5 = arith.constant dense<0.000000e+00> : vector<128xf32>
    %11 = vector.multi_reduction <add>, %10, %cst_5 [0] : vector<8x128xf32> to vector<128xf32>
    %12 = vector.shape_cast %11 : vector<128xf32> to vector<1x128xf32>
    %cst_6 = arith.constant 8.000000e+00 : f32
    %13 = vector.broadcast %cst_6 : f32 to vector<1x128xf32>
    %14 = arith.divf %12, %13 : vector<1x128xf32>
    %cst_7 = arith.constant 9.99999974E-6 : f32
    %15 = vector.broadcast %cst_7 : f32 to vector<1x128xf32>
    %16 = arith.addf %14, %15 : vector<1x128xf32>
    %17 = math.rsqrt %16 : vector<1x128xf32>
    %18 = vector.broadcast %17 : vector<1x128xf32> to vector<8x128xf32>
    %19 = arith.mulf %9, %18 : vector<8x128xf32>
    %c128_i32 = arith.constant 128 : i32
    %20 = arith.muli %arg0, %c128_i32 : i32
    %21 = tpu.assume_multiple %20, 128 : i32
    %c0_8 = arith.constant 0 : index
    %22 = arith.index_cast %21 : i32 to index
    %23 = vector.load %arg4[%c0_8, %22] : memref<8x256xf32, #tpu.memory_space<vmem>>, vector<8x128xf32>
    tpu.vector_store %arg4[%c0_8, %22], %19 {strides = array<i32>} : memref<8x256xf32, #tpu.memory_space<vmem>>, vector<8x128xf32>,
    %c1_i32 = arith.constant 1 : i32
    %24 = arith.cmpi eq, %arg0, %c1_i32 : i32
    %25 = arith.extui %24 : i1 to i32
    %c0_i32 = arith.constant 0 : i32
    %26 = arith.cmpi ne, %25, %c0_i32 : i32
    scf.if %26 {
      %c0_9 = arith.constant 0 : index
      %c0_10 = arith.constant 0 : index
      %27 = vector.load %arg4[%c0_9, %c0_10] : memref<8x256xf32, #tpu.memory_space<vmem>>, vector<8x256xf32>
      %cst_11 = arith.constant dense<0xFF800000> : vector<8xf32>
      %28 = vector.multi_reduction <maximumf>, %27, %cst_11 [1] : vector<8x256xf32> to vector<8xf32>
      %29 = vector.shape_cast %28 : vector<8xf32> to vector<8x1xf32>
      %30 = vector.broadcast %29 : vector<8x1xf32> to vector<8x256xf32>
      %31 = arith.subf %27, %30 : vector<8x256xf32>
      %32 = math.exp %31 : vector<8x256xf32>
      %cst_12 = arith.constant dense<0.000000e+00> : vector<8xf32>
      %33 = vector.multi_reduction <add>, %32, %cst_12 [1] : vector<8x256xf32> to vector<8xf32>
      %34 = vector.shape_cast %33 : vector<8xf32> to vector<8x1xf32>
      %35 = vector.broadcast %34 : vector<8x1xf32> to vector<8x256xf32>
      %36 = arith.divf %32, %35 : vector<8x256xf32>
      %c0_13 = arith.constant 0 : index
      %c0_14 = arith.constant 0 : index
      %37 = vector.load %arg3[%c0_13, %c0_14] : memref<8x256xf32, #tpu.memory_space<vmem>>, vector<8x256xf32>
      tpu.vector_store %arg3[%c0_13, %c0_14], %36 {strides = array<i32>} : memref<8x256xf32, #tpu.memory_space<vmem>>, vector<8x256xf32>,
    } else {
    }
    return
  }
  func.func @transform_0(%arg0: i32) -> (i32, i32) {
    %c0_i32 = arith.constant 0 : i32
    %c0_i32_0 = arith.constant 0 : i32
    %c0_i32_1 = arith.constant 0 : i32
    return %c0_i32, %c0_i32_0 : i32, i32
  }
  func.func @transform_1(%arg0: i32) -> (i32, i32) {
    %c0_i32 = arith.constant 0 : i32
    %c0_i32_0 = arith.constant 0 : i32
    return %arg0, %c0_i32 : i32, i32
  }
  func.func @transform_2(%arg0: i32) -> (i32, i32) {
    %c0_i32 = arith.constant 0 : i32
    %c0_i32_0 = arith.constant 0 : i32
    %c0_i32_1 = arith.constant 0 : i32
    return %c0_i32, %c0_i32_0 : i32, i32
  }
}

</mosaic_0001>

<bundles_post_ra>
// kernel: tpu_custom_call.1
= control target key start
LH: loop header
LB: loop body
LE: loop exit
PB: predicated region body
PF: predicated region fallthrough
CT: control target
= control target key end

     0   :  { %7 = vsyncpa [#allocation4], 0  ;;  %s422_s9 = smov 0   ;;  %s475_s0 = inlined_call_operand.vmem [shape: bf16[8,32], index: 0, kind: input, shape index: {}]   ;;  %s476_s1 = inlined_call_operand.vmem [shape: f32[256,32], index: 1, kind: input, shape index: {}]   ;;  %s477_s2 = inlined_call_operand.hbm [shape: f32[8,256], index: 2, kind: output, shape index: {}]  }
   0x1 LB: > { %s428_s10 = sadd.s32 4294967295, %s403_s9   ;;  %p328_p0 = scmp.ge.s32.totalorder %s403_s9, 1  ;;  %s403_s9 = sphi %s422_s9, %s13_s9  }
   0x2   : > { %p109_p1 = scmp.lt.s32.totalorder %s403_s9, 3 }
   0x4   : > { %p110_p2 = pnand %p328_p0, %p109_p1 }
   0x5   : > { %s329_s11 = sshll.u32 (!%p110_p2), %s428_s10, 4  ;;  %s332_s18 = sshll.u32 (!%p110_p2), %s428_s10, 7 }
   0x6   : > { %113 = sbr.rel (%p110_p2) target bundleno = 543 (0x21f), region = 28  ;;  %p127_p3 = scmp.lt.s32.totalorder (!%p110_p2), %s329_s11, 31 }
   0x7   : > { %s234_s19 = sshra.s32 (!%p110_p2), %s332_s18, 7  ;;  %p334_p4 = scmp.ne.s32.totalorder (!%p110_p2), %s428_s10, 1 }
   0x8   : > { %s333_s20 = sshll.u32 (!%p110_p2), %s234_s19, 3 }
   0x9   : > { %s237_s21 = scalar_lea.vmem (!%p110_p2), [#allocation2], %s333_s20 }
   0xb   : > { %s479_s11 = smov (!%p127_p3, %s329_s11), 31  ;;  %vm157_vm0 = vcmask 261120   ;;  %v156_v32 = vld [vmem:[%s475_s0] sm:$0xf]  ;;  %v405_v33 = vmov 8.0  }
   0xc   : > { %s330_s12 = sshll.u32 %s479_s11, 3  ;;  %355 = vrcp.f32 %v405_v33 }
   0xd   : > { %s436_s15 = scalar_lea.vmem %s476_s1, %s330_s12 }
   0xe   : > { %v146_v0 = vld [vmem:[%s436_s15 + $0x70] sm:$0xff]  ;;  %v147_v1 = vld [vmem:[%s436_s15 + $0x78] sm:$0xff]  ;;  %v144_v3 = vld [vmem:[%s436_s15 + $0x60] sm:$0xff] }
   0xf   : > { %v155_v2 = vpack.c.bf16 %v147_v1, %v146_v0  ;;  %v145_v4 = vld [vmem:[%s436_s15 + $0x68] sm:$0xff]  ;;  %v142_v8 = vld [vmem:[%s436_s15 + $0x50] sm:$0xff]  ;;  %v143_v9 = vld [vmem:[%s436_s15 + $0x58] sm:$0xff] }
  0x10   : > { %v154_v6 = vpack.c.bf16 %v145_v4, %v144_v3  ;;  %v153_v10 = vpack.c.bf16 %v143_v9, %v142_v8  ;;  %v140_v12 = vld [vmem:[%s436_s15 + $0x40] sm:$0xff]  ;;  %v141_v13 = vld [vmem:[%s436_s15 + $0x48] sm:$0xff]  ;;  %v138_v16 = vld [vmem:[%s436_s15 + $0x30] sm:$0xff] }
  0x11   : > { %v183_v5 = vsel %vm157_vm0, %v155_v2, 0  ;;  %v152_v14 = vpack.c.bf16 %v141_v13, %v140_v12  ;;  %v139_v17 = vld [vmem:[%s436_s15 + $0x38] sm:$0xff]  ;;  %v136_v20 = vld [vmem:[%s436_s15 + $0x20] sm:$0xff]  ;;  %v137_v21 = vld [vmem:[%s436_s15 + $0x28] sm:$0xff] }
  0x12   : > { %185 = vmatpush.bf16.xpose.msra.mxu0 %v183_v5  ;;  %v180_v7 = vsel %vm157_vm0, %v154_v6, 0  ;;  %v177_v11 = vsel %vm157_vm0, %v153_v10, 0  ;;  %v151_v18 = vpack.c.bf16 %v139_v17, %v138_v16  ;;  %v150_v22 = vpack.c.bf16 %v137_v21, %v136_v20  ;;  %v134_v24 = vld [vmem:[%s436_s15 + $0x10] sm:$0xff]  ;;  %v135_v25 = vld [vmem:[%s436_s15 + $0x18] sm:$0xff]  ;;  %v132_v28 = vld [vmem:[%s436_s15] sm:$0xff]  ;;  %v356_v34 = vpop.eup %355 }
  0x13   : > { %v174_v15 = vsel %vm157_vm0, %v152_v14, 0  ;;  %v149_v26 = vpack.c.bf16 %v135_v25, %v134_v24  ;;  %v133_v29 = vld [vmem:[%s436_s15 + $0x8] sm:$0xff]  ;;  %v205_v35 = vmul.f32 8.0, %v356_v34  ;;  %vm209_vm1 = vweird.f32 %v356_v34 }
  0x14   : > { %v171_v19 = vsel %vm157_vm0, %v151_v18, 0  ;;  %v168_v23 = vsel %vm157_vm0, %v150_v22, 0  ;;  %v148_v30 = vpack.c.bf16 %v133_v29, %v132_v28 }
  0x15   : > { %v165_v27 = vsel %vm157_vm0, %v149_v26, 0  ;;  %v206_v36 = vsub.f32 1.0, %v205_v35 }
  0x16   : > { %v162_v31 = vsel %vm157_vm0, %v148_v30, 0 }
  0x17   : > { %v207_v39 = vmul.f32 %v356_v34, %v206_v36 }
  0x19   : > { %v208_v42 = vadd.f32 %v356_v34, %v207_v39 }
  0x1a   : > { %186 = vmatpush.bf16.xpose.msra.mxu0 %v180_v7 }
  0x1b   : > { %v210_v46 = vsel %vm209_vm1, %v356_v34, %v208_v42 }
  0x22   : > { %187 = vmatpush.bf16.xpose.msra.mxu0 %v177_v11 }
  0x2a   : > { %188 = vmatpush.bf16.xpose.msra.mxu0 %v174_v15 }
  0x32   : > { %189 = vmatpush.bf16.xpose.msra.mxu0 %v171_v19 }
  0x3a   : > { %190 = vmatpush.bf16.xpose.msra.mxu0 %v168_v23 }
  0x42   : > { %191 = vmatpush.bf16.xpose.msra.mxu0 %v165_v27 }
  0x4a   : > { %192 = vmatpush.bf16.xpose.msra.mxu0 %v162_v31 }
  0x51   : > { %331 = vmatmul.msk.bf16.vlgmr.msra.gmra.mxu0 %vm157_vm0, %v156_v32 }
  0xce   : > { %v194_v37 = vpop.f32.mrf.mxu0 }
  0xcf   : > { %v198_v38 = vrot.slane %v194_v37, 4 }
  0xd1   : > { %v199_v40 = vadd.f32 %v198_v38, %v194_v37 }
  0xd3   : > { %v200_v41 = vrot.slane %v199_v40, 2 }
  0xd5   : > { %v201_v43 = vadd.f32 %v200_v41, %v199_v40 }
  0xd6   : > { %v196_v44 = vpop.f32.mrf.mxu0 }
  0xd7   : > { %v202_v45 = vrot.slane %v201_v43, 1 }
  0xd9   : > { %v203_v47 = vadd.f32 %v202_v45, %v201_v43 }
  0xdb   : > { %v211_v48 = vmul.f32 %v210_v46, %v203_v47 }
  0xdd   : > { %v212_v49 = vsub.f32 %v194_v37, %v211_v48 }
  0xdf   : > { %v213_v50 = vmul.f32 %v212_v49, %v212_v49 }
  0xe1   : > { %v214_v51 = vrot.slane %v213_v50, 4 }
  0xe3   : > { %v215_v52 = vadd.f32 %v214_v51, %v213_v50 }
  0xe5   : > { %v216_v53 = vrot.slane %v215_v52, 2 }
  0xe7   : > { %v217_v54 = vadd.f32 %v216_v53, %v215_v52 }
  0xe9   : > { %v218_v55 = vrot.slane %v217_v54, 1 }
  0xeb   : > { %v219_v56 = vadd.f32 %v218_v55, %v217_v54 }
  0xed   : > { %v220_v57 = vmul.f32 %v219_v56, %v210_v46 }
  0xef   : > { %v221_v58 = vadd.f32 1e-05, %v220_v57 }
  0xf1   : > { %357 = vrsqrt.f32 %v221_v58  ;;  %vm228_vm3 = vweird.f32 %v221_v58 }
  0xf7   : > { %v358_v59 = vpop.eup %357 }
  0xf8   : > { %v223_v60 = vmul.f32 %v358_v59, %v221_v58  ;;  %vm229_vm2 = vweird.f32 %v358_v59 }
  0xf9   : > { %vm230_vm4 = vmor %vm228_vm3, %vm229_vm2 }
  0xfa   : > { %v224_v61 = vmul.f32 %v358_v59, %v223_v60 }
  0xfc   : > { %v225_v62 = vmul.f32 0.5, %v224_v61 }
  0xfe   : > { %v226_v63 = vsub.f32 1.5, %v225_v62 }
 0x100   : > { %v227_v0 = vmul.f32 %v358_v59, %v226_v63 }
 0x101   : > { %242 = sbr.rel (%p334_p4) target bundleno = 538 (0x21a), region = 32 }
 0x102   : > { %v231_v1 = vsel %vm230_vm4, %v358_v59, %v227_v0 }
 0x103   : > { %v232_v2 = vmul.f32 %v231_v1, %v212_v49 }
 0x105   : > { %238 = vst [vmem:[%s237_s21] sm:$0xff] %v232_v2 }
 0x10c   : > { %v243_v3 = vld [vmem:[#allocation2] sm:$0xff]  ;;  %v244_v4 = vld [vmem:[#allocation2 + $0x8] sm:$0xff] }
 0x10d   : > { %v245_v5 = vmax.f32 %v243_v3, %v244_v4 }
 0x10f   : > { %246 = vmax.xlane.f32.xlu0 %v245_v5 }
 0x182   : > { %v247_v6 = vpop.xlane.xlu0 %246 }
 0x183   : > { %v248_v7 = vsub.f32 %v243_v3, %v247_v6  ;;  %v249_v8 = vsub.f32 %v244_v4, %v247_v6 }
 0x185   : > { %v250_v9 = vmul.f32 1.442695, %v248_v7  ;;  %v252_v10 = vmul.f32 1.442695, %v249_v8 }
 0x187   : > { %359 = vpow2.f32 %v250_v9 }
 0x188   : > { %361 = vpow2.f32 %v252_v10 }
 0x18d   : > { %v360_v11 = vpop.eup %359 }
 0x18e   : > { %v362_v12 = vpop.eup %361 }
 0x18f   : > { %v254_v13 = vadd.f32 %v362_v12, %v360_v11 }
 0x191   : > { %255 = vadd.xlane.f32.xlu0 %v254_v13 }
 0x204   : > { %v256_v14 = vpop.xlane.xlu0 %255 }
 0x205   : > { %363 = vrcp.f32 %v256_v14  ;;  %v268_v18 = vand.u32 2147483648, %v256_v14  ;;  %v266_v20 = vand.u32 2147483647, %v256_v14  ;;  %vm262_vm6 = vweird.f32 %v256_v14 }
 0x207   : > { %v269_v22 = vor.u32 1.1754944e-38, %v268_v18  ;;  %vm267_vm8 = vcmp.eq.f32.partialorder %v266_v20, 8.507059e+37 }
 0x20b   : > { %v364_v15 = vpop.eup %363 }
 0x20c   : > { %v258_v16 = vmul.f32 %v364_v15, %v256_v14  ;;  %vm263_vm5 = vweird.f32 %v364_v15 }
 0x20d   : > { %vm264_vm7 = vmor %vm262_vm6, %vm263_vm5 }
 0x20e   : > { %v259_v17 = vsub.f32 1.0, %v258_v16 }
 0x210   : > { %v260_v19 = vmul.f32 %v364_v15, %v259_v17 }
 0x212   : > { %v261_v21 = vadd.f32 %v364_v15, %v260_v19 }
 0x214   : > { %v265_v23 = vsel %vm264_vm7, %v364_v15, %v261_v21 }
 0x215   : > { %v270_v24 = vsel %vm267_vm8, %v269_v22, %v265_v23 }
 0x216   : > { %v271_v25 = vmul.f32 %v360_v11, %v270_v24  ;;  %v272_v26 = vmul.f32 %v362_v12, %v270_v24 }
 0x218   : > { %273 = vst [vmem:[#allocation3] sm:$0xff] %v271_v25 }
 0x219   : > { %274 = vst [vmem:[#allocation3 + $0x8] sm:$0xff] %v272_v26 }
 0x21a PF: > { %p343_p5 = scmp.eq.s32.totalorder %s428_s10, 1  ;;  %s406_s22 = smov [#allocation3]  }
 0x21b   : > { %s281_s23 = sshll.u32 %s406_s22, 4  ;;  %s283_s26 = sshll.u32 %s477_s2, 4  ;;  %s282_s23 = int_to_ptr.vmem [resolvable:$true] %s281_s23  ;;  %s284_s26 = int_to_ptr.hbm [resolvable:$true] %s283_s26 }
 0x21c   : > { %340 = dma.vmem_to_hbm [thread:$0]  (%p343_p5), %s282_s23, 256, %s284_s26, [#allocation4]  }
 0x21d   : > { %398 = dma.done.wait (%p343_p5), [#allocation4], 256  }
 0x21e   : > { %400 = vsyncadd (%p343_p5), [#allocation4], 4294967040 }
 0x21f PF: > { %s13_s9 = sadd.s32 1, %s403_s9  }
 0x220   : > { %p10_p6 = scmp.ge.s32.totalorder %s13_s9, 4  }
 0x222   :  { %12 = sbr.rel (!%p10_p6) target bundleno = 1 (0x1), region = 60 }
 0x227   :  { %297 = vsyncpa [#allocation4], 1 }
 0x228   :  { %299 = vsyncpa [#allocation4 + $0x1], 1 }

</bundles_post_ra>
